<compile_context>
chip_gen: v7x
topology: tpu7x:2x2x1
jax: 0.10.0
libtpu: 0.0.40
codegen_flags: <defaults>
</compile_context>

<pallas_src>
import functools
import math
from typing import NamedTuple

import jax
import jax.numpy as jnp
from jax.experimental import pallas as pl
from jax.experimental.pallas import tpu as pltpu


def _round_up(a: int, m: int) -> int:
    return (a + m - 1) // m * m


def _residual_kernel(x_ref, w_ref, o_ref):
    """One row-tile: out = x @ M, with M = (I + prod_l W_l^T) / sqrt(2).

    x_ref: (tile_rows, Hp)   input rows (VMEM), native dtype
    w_ref: (Hp, Hp)          collapsed (optionally block-diag-packed) matrix
    o_ref: (tile_rows, Hp)   output rows (VMEM)
    """
    o_ref[...] = jnp.dot(
        x_ref[...], w_ref[...], preferred_element_type=jnp.float32
    ).astype(o_ref.dtype)
    # TODO(synk): non-None activation would require the unrolled per-layer
    # matmul chain here instead of the collapsed single matmul.


class ResidualParams(NamedTuple):
    m: jax.Array          # (H, H) collapsed matrix
    m_packed: jax.Array   # (pack*H, pack*H) lane-dense block-diagonal version
    pack: int             # lane-packing factor (1 if H >= 128 or 128 % H != 0)


def prepare_params(weights, param_dtype=None) -> ResidualParams:
    """One-time (init-path) parameter preparation — hoisted out of the forward.

    Args:
      weights: (n_layers, H, H) stacked nn.Linear weights in PyTorch layout
               (out_features, in_features), bias=False.
      param_dtype: dtype to store the collapsed matrix in (default: weights.dtype).
    Returns:
      ResidualParams with the collapsed matrix M = (I + W_0^T @ W_1^T @ ...) / sqrt(2)
      plus its lane-dense block-diagonal expansion for small H.
    """
    n_layers, H, H2 = weights.shape
    assert H == H2
    dtype = weights.dtype if param_dtype is None else param_dtype

    # Build the affine-collapsed matrix in f32 at full precision (init-time cost).
    w32 = weights.astype(jnp.float32)
    chain = jnp.eye(H, dtype=jnp.float32)
    for layer in range(n_layers):          # x @ W_0^T @ W_1^T @ ...
        chain = jnp.dot(chain, w32[layer].T, precision=jax.lax.Precision.HIGHEST)
    m = ((jnp.eye(H, dtype=jnp.float32) + chain) * (1.0 / math.sqrt(2.0))).astype(dtype)

    # Lane-dense block-diagonal packing for small hidden sizes.
    pack = 1
    m_packed = m
    if H < 128 and 128 % H == 0:
        pack = 128 // H
        eye = jnp.eye(pack, dtype=m.dtype)
        m_packed = jnp.einsum("ab,pq->apbq", eye, m).reshape(pack * H, pack * H)
    return ResidualParams(m=m, m_packed=m_packed, pack=pack)


def residual_layer(x, params: ResidualParams, *, tile_rows=1024):
    """Pallas ResidualLayer forward.

    Args:
      x:         (*, H) input array.
      params:    output of prepare_params().
      tile_rows: row tile upper bound (rounded to a multiple of 8).
    Returns:
      (*, H) array, same dtype as x.
    """
    orig_shape = x.shape
    H = orig_shape[-1]
    x2d = x.reshape(-1, H)
    rows = x2d.shape[0]

    # Pick packed vs. unpacked path without introducing a wrapper-side pad/slice.
    pack = params.pack
    if pack > 1 and rows % pack == 0:
        Hp = pack * H
        w = params.m_packed
        x_kernel = x2d.reshape(rows // pack, Hp)   # lane-dense slab, zero-copy reshape
    else:
        Hp = H
        w = params.m
        x_kernel = x2d
        pack = 1
    n_rows = x_kernel.shape[0]

    # Tile sizing: large tiles to sit on the HBM roofline, but keep grid >= ~4
    # (when rows allow) so v7x's two TensorCores each get several pipelined steps.
    tile_rows = min(_round_up(max(tile_rows, 8), 8), _round_up(n_rows, 8))
    tile_rows = min(tile_rows, max(8, _round_up(-(-n_rows // 4), 8)))
    tile_rows = max(8, tile_rows)
    grid = (pl.cdiv(n_rows, tile_rows),)

    # VMEM budget computed from the real footprint (not hard-coded to 64 MiB):
    # double-buffered in + out tiles, double-buffered (resident) weights, slack.
    x_bytes = tile_rows * Hp * jnp.dtype(x.dtype).itemsize
    w_bytes = Hp * Hp * jnp.dtype(w.dtype).itemsize
    footprint = 2 * (2 * x_bytes) + 2 * w_bytes
    vmem_limit = int(min(32 * 1024 * 1024, 2 * footprint + 4 * 1024 * 1024))

    out_kernel = pl.pallas_call(
        _residual_kernel,
        out_shape=jax.ShapeDtypeStruct((n_rows, Hp), x.dtype),
        grid_spec=pltpu.PrefetchScalarGridSpec(
            num_scalar_prefetch=0,
            grid=grid,
            in_specs=[
                pl.BlockSpec((tile_rows, Hp), lambda i: (i, 0)),
                # Constant index_map -> same full block every grid step; Pallas
                # skips the re-DMA, so M is fetched once and stays resident.
                pl.BlockSpec((Hp, Hp), lambda i: (0, 0)),
            ],
            out_specs=pl.BlockSpec((tile_rows, Hp), lambda i: (i, 0)),
        ),
        compiler_params=pltpu.CompilerParams(
            dimension_semantics=("parallel",),
            vmem_limit_bytes=vmem_limit,
        ),
    )(x_kernel, w)

    return out_kernel.reshape(orig_shape)


def _reference(x, weights):
    """Pure-JAX reference matching the PyTorch forward (high precision)."""
    H = x.shape[-1]
    x2d = x.reshape(-1, H).astype(jnp.float32)
    h = x2d
    for layer in range(weights.shape[0]):
        h = jnp.dot(h, weights[layer].astype(jnp.float32).T,
                    precision=jax.lax.Precision.HIGHEST)
    out = (x2d + h) * (1.0 / math.sqrt(2.0))
    return out.astype(x.dtype).reshape(x.shape)


if __name__ == "__main__":
    key = jax.random.PRNGKey(0)
    k1, k2, k3, k4 = jax.random.split(key, 4)
    n_layers = 2

    # --- Case 1: module-default-like shape, hidden=32 (lane-packed, pack=4) ---
    hidden = 32
    x1 = jax.random.normal(k1, (2, 16, hidden), dtype=jnp.float32)
    w1 = jax.random.normal(k2, (n_layers, hidden, hidden),
                           dtype=jnp.float32) * (1.0 / hidden ** 0.5)
    p1 = prepare_params(w1)                       # done once at "init"
    out1 = jax.block_until_ready(residual_layer(x1, p1))
    ref1 = _reference(x1, w1)
    assert out1.shape == x1.shape and out1.dtype == x1.dtype
    assert jnp.allclose(out1, ref1, atol=2e-4, rtol=2e-4), "case1 mismatch"

    # --- Case 2: more rows so grid >= 4 (pipelined / megacore-shardable) ---
    x2 = jax.random.normal(k3, (4, 512, hidden), dtype=jnp.float32)
    out2 = jax.block_until_ready(residual_layer(x2, p1))
    ref2 = _reference(x2, w1)
    assert jnp.allclose(out2, ref2, atol=2e-4, rtol=2e-4), "case2 mismatch"

    # --- Case 3: hidden=128 (no packing), odd row count (ragged last tile) ---
    hidden3 = 128
    x3 = jax.random.normal(k4, (2, 100, hidden3), dtype=jnp.float32)
    w3 = jax.random.normal(k2, (n_layers, hidden3, hidden3),
                           dtype=jnp.float32) * (1.0 / hidden3 ** 0.5)
    p3 = prepare_params(w3)
    out3 = jax.block_until_ready(residual_layer(x3, p3))
    ref3 = _reference(x3, w3)
    assert jnp.allclose(out3, ref3, atol=2e-4, rtol=2e-4), "case3 mismatch"

    # --- Case 4: rows not divisible by pack -> unpacked fallback (no pad/slice) ---
    x4 = jax.random.normal(k1, (3, 7, hidden), dtype=jnp.float32)   # 21 rows, pack=4
    out4 = jax.block_until_ready(residual_layer(x4, p1))
    ref4 = _reference(x4, w1)
    assert jnp.allclose(out4, ref4, atol=2e-4, rtol=2e-4), "case4 mismatch"

    print("KERNEL_OK")
</pallas_src>

<mosaic_0001>
module attributes {stable_mosaic.version = 11 : i64} {
  func.func @_residual_kernel(%arg0: i32, %arg1: memref<8x128xf32, #tpu.memory_space<vmem>>, %arg2: memref<128x128xf32, #tpu.memory_space<vmem>>, %arg3: memref<8x128xf32, #tpu.memory_space<vmem>>) attributes {dimension_semantics = [#tpu.dimension_semantics<parallel>], iteration_bounds = array<i64: 1>, scalar_prefetch = 0 : i64, scratch_operands = 0 : i64, tpu.core_type = #tpu.core_type<tc>, window_params = [{transform_indices = @transform_0, window_bounds = array<i64: 8, 128>}, {pipeline_mode = #tpu.pipeline_mode<synchronous>, transform_indices = @transform_1, window_bounds = array<i64: 128, 128>}, {transform_indices = @transform_2, window_bounds = array<i64: 8, 128>}]} {
    %c0 = arith.constant 0 : index
    %c0_0 = arith.constant 0 : index
    %0 = vector.load %arg1[%c0, %c0_0] : memref<8x128xf32, #tpu.memory_space<vmem>>, vector<8x128xf32>
    %c0_1 = arith.constant 0 : index
    %c0_2 = arith.constant 0 : index
    %1 = vector.load %arg2[%c0_1, %c0_2] : memref<128x128xf32, #tpu.memory_space<vmem>>, vector<128x128xf32>
    %cst = arith.constant dense<0.000000e+00> : vector<8x128xf32>
    %2 = tpu.matmul %0, %1, %cst {dimension_numbers = #tpu.dot_dimension_numbers<[1], [0], [0], [1], [0, 0, 1, 1], [], []>} : vector<8x128xf32>, vector<128x128xf32>, vector<8x128xf32> -> vector<8x128xf32>
    %c0_3 = arith.constant 0 : index
    %c0_4 = arith.constant 0 : index
    %3 = vector.load %arg3[%c0_3, %c0_4] : memref<8x128xf32, #tpu.memory_space<vmem>>, vector<8x128xf32>
    tpu.vector_store %arg3[%c0_3, %c0_4], %2 {strides = array<i32>} : memref<8x128xf32, #tpu.memory_space<vmem>>, vector<8x128xf32>,
    return
  }
  func.func @transform_0(%arg0: i32) -> (i32, i32) {
    %c0_i32 = arith.constant 0 : i32
    %c0_i32_0 = arith.constant 0 : i32
    return %arg0, %c0_i32 : i32, i32
  }
  func.func @transform_1(%arg0: i32) -> (i32, i32) {
    %c0_i32 = arith.constant 0 : i32
    %c0_i32_0 = arith.constant 0 : i32
    %c0_i32_1 = arith.constant 0 : i32
    return %c0_i32, %c0_i32_0 : i32, i32
  }
  func.func @transform_2(%arg0: i32) -> (i32, i32) {
    %c0_i32 = arith.constant 0 : i32
    %c0_i32_0 = arith.constant 0 : i32
    return %arg0, %c0_i32 : i32, i32
  }
}

</mosaic_0001>

<bundles_post_ra>
// kernel: tpu_custom_call.1
= control target key start
LH: loop header
LB: loop body
LE: loop exit
PB: predicated region body
PF: predicated region fallthrough
CT: control target
= control target key end

     0   :  { %7 = vsyncpa [#allocation3], 0  ;;  %s364_s0 = inlined_call_operand.hbm [shape: f32[8,128], index: 0, kind: input, shape index: {}]   ;;  %s365_s1 = inlined_call_operand.hbm [shape: f32[128,128], index: 1, kind: input, shape index: {}]   ;;  %s366_s2 = inlined_call_operand.hbm [shape: f32[8,128], index: 2, kind: output, shape index: {}]  }
   0x1   :  { %8 = vsyncpa [#allocation6], 0 }
   0x2   :  { %9 = vsyncpa [#allocation4], 0  ;;  %s298_s9 = smov [#allocation2]   ;;  %s299_s11 = smov [#allocation5]  }
   0x3   :  { %s16_s10 = sshll.u32 %s298_s9, 4  ;;  %s25_s12 = sshll.u32 %s299_s11, 4  ;;  %s17_s10 = int_to_ptr.vmem [resolvable:$true] %s16_s10  ;;  %s321_s12 = int_to_ptr.vmem [resolvable:$true] %s25_s12 }
   0x4   :  { %s226_s15 = scalar_lea.hbm %s364_s0, 128 }
   0x5   :  { %p227_p0 = scmp.ne.s32.totalorder %s364_s0, %s226_s15  ;;  %p230_p1 = scmp.lt.u32.totalorder %s226_s15, %s364_s0 }
   0x7   :  { %p232_p2 = pnand %p230_p1, %p227_p0 }
   0x9   :  { %235 = shalt.err (!%p232_p2)
}
   0xa   :  { %s236_s20 = scalar_lea.vmem %s17_s10, 128  ;;  %p241_p4 = scmp.lt.s32.totalorder %s17_s10, %s17_s10 }
   0xb   :  { %p237_p3 = scmp.ne.s32.totalorder %s17_s10, %s236_s20  ;;  %p242_p5 = scmp.lt.s32.totalorder %s236_s20, %s236_s20 }
   0xd   :  { %p243_p6 = por %p242_p5, %p241_p4 }
   0xf   :  { %p244_p7 = pnand %p243_p6, %p237_p3 }
  0x11   :  { %247 = shalt.err (!%p244_p7)
}
  0x12   :  { %19 = dma.hbm_to_vmem [thread:$0]  %s364_s0, 128, %s17_s10, [#allocation3]  }
  0x13   :  { %s248_s25 = scalar_lea.hbm %s365_s1, 2048 }
  0x14   :  { %p249_p8 = scmp.ne.s32.totalorder %s365_s1, %s248_s25  ;;  %p252_p9 = scmp.lt.u32.totalorder %s248_s25, %s365_s1 }
  0x16   :  { %p254_p10 = pnand %p252_p9, %p249_p8 }
  0x18   :  { %257 = shalt.err (!%p254_p10)
}
  0x19   :  { %s258_s30 = scalar_lea.vmem %s321_s12, 2048  ;;  %p263_p12 = scmp.lt.s32.totalorder %s321_s12, %s321_s12 }
  0x1a   :  { %p259_p11 = scmp.ne.s32.totalorder %s321_s12, %s258_s30  ;;  %p264_p13 = scmp.lt.s32.totalorder %s258_s30, %s258_s30 }
  0x1c   :  { %p265_p0 = por %p264_p13, %p263_p12 }
  0x1e   :  { %p266_p1 = pnand %p265_p0, %p259_p11 }
  0x20   :  { %269 = shalt.err (!%p266_p1)
}
  0x21   :  { %s300_s0 = smov 128   ;;  %s301_s3 = smov 8  }
  0x22   :  { %31 = dma.hbm_to_vmem [thread:$0]  %s365_s1, 2048, %s321_s12, [#allocation6], %s300_s0, %s300_s0, %s301_s3  }
  0x23   :  { %292 = dma.done.wait [#allocation3], 128  }
  0x24   :  { %293 = vsyncadd [#allocation3], 4294967168 }
  0x25   :  { %294 = dma.done.wait [#allocation6], 2048  }
  0x26   :  { %295 = vsyncadd [#allocation6], 4294965248  ;;  %v302_v0 = vmov 0.0|0.0   ;;  %vm303_vm0 = vmmov 0   ;;  %v304_v1 = vmov 0.0   ;;  %v39_v2 = vld [vmem:[#allocation5] sm:$0xff] }
  0x27   :  { %194 = vmatprep.subr.bf16.mxu0 %v302_v0  ;;  %191 = vmatprep.mubr.msk.f32.mxu0 %vm303_vm0, %v304_v1  ;;  %v40_v3 = vld [vmem:[#allocation5 + $0x8] sm:$0xff]  ;;  %v41_v4 = vld [vmem:[#allocation5 + $0x10] sm:$0xff]  ;;  %v42_v6 = vld [vmem:[#allocation5 + $0x18] sm:$0xff]  ;;  %s305_s1 = smov [#allocation7]  }
  0x28   :  { %v195_v5 = vpack.c.bf16 %v40_v3, %v39_v2  ;;  %v198_v7 = vpack.c.bf16 %v42_v6, %v41_v4  ;;  %v43_v8 = vld [vmem:[#allocation5 + $0x20] sm:$0xff]  ;;  %v44_v9 = vld [vmem:[#allocation5 + $0x28] sm:$0xff]  ;;  %v45_v11 = vld [vmem:[#allocation5 + $0x30] sm:$0xff]  ;;  %s132_s6 = sshll.u32 %s305_s1, 4  ;;  %s133_s6 = int_to_ptr.vmem [resolvable:$true] %s132_s6 }
  0x29   :  { %v201_v10 = vpack.c.bf16 %v44_v9, %v43_v8  ;;  %v46_v12 = vld [vmem:[#allocation5 + $0x38] sm:$0xff]  ;;  %v47_v14 = vld [vmem:[#allocation5 + $0x40] sm:$0xff]  ;;  %v48_v15 = vld [vmem:[#allocation5 + $0x48] sm:$0xff]  ;;  %s270_s7 = scalar_lea.vmem %s133_s6, 128  ;;  %p275_p3 = scmp.lt.s32.totalorder %s133_s6, %s133_s6 }
  0x2a   :  { %196 = vmatpush3.bf16.msra.mxu0 %v195_v5  ;;  %v204_v13 = vpack.c.bf16 %v46_v12, %v45_v11  ;;  %v207_v16 = vpack.c.bf16 %v48_v15, %v47_v14  ;;  %v49_v17 = vld [vmem:[#allocation5 + $0x50] sm:$0xff]  ;;  %v50_v18 = vld [vmem:[#allocation5 + $0x58] sm:$0xff]  ;;  %v51_v20 = vld [vmem:[#allocation5 + $0x60] sm:$0xff]  ;;  %p271_p2 = scmp.ne.s32.totalorder %s133_s6, %s270_s7  ;;  %p276_p4 = scmp.lt.s32.totalorder %s270_s7, %s270_s7 }
  0x2b   :  { %197 = vmatprep.subr.bf16.mxu0 %v302_v0  ;;  %v210_v19 = vpack.c.bf16 %v50_v18, %v49_v17  ;;  %v52_v21 = vld [vmem:[#allocation5 + $0x68] sm:$0xff]  ;;  %v53_v23 = vld [vmem:[#allocation5 + $0x70] sm:$0xff]  ;;  %v54_v24 = vld [vmem:[#allocation5 + $0x78] sm:$0xff] }
  0x2c   :  { %v213_v22 = vpack.c.bf16 %v52_v21, %v51_v20  ;;  %v216_v25 = vpack.c.bf16 %v54_v24, %v53_v23  ;;  %v38_v26 = vld [vmem:[#allocation2] sm:$0xff]  ;;  %p277_p5 = por %p276_p4, %p275_p3 }
  0x2e   :  { %199 = vmatpush3.bf16.msra.mxu0 %v198_v7  ;;  %p278_p6 = pnand %p277_p5, %p271_p2 }
  0x2f   :  { %200 = vmatprep.subr.bf16.mxu0 %v302_v0 }
  0x32   :  { %202 = vmatpush3.bf16.msra.mxu0 %v201_v10 }
  0x33   :  { %203 = vmatprep.subr.bf16.mxu0 %v302_v0 }
  0x36   :  { %205 = vmatpush3.bf16.msra.mxu0 %v204_v13 }
  0x37   :  { %206 = vmatprep.subr.bf16.mxu0 %v302_v0 }
  0x3a   :  { %208 = vmatpush3.bf16.msra.mxu0 %v207_v16 }
  0x3b   :  { %209 = vmatprep.subr.bf16.mxu0 %v302_v0 }
  0x3e   :  { %211 = vmatpush3.bf16.msra.mxu0 %v210_v19 }
  0x3f   :  { %212 = vmatprep.subr.bf16.mxu0 %v302_v0 }
  0x42   :  { %214 = vmatpush3.bf16.msra.mxu0 %v213_v22 }
  0x43   :  { %215 = vmatprep.subr.bf16.mxu0 %v302_v0 }
  0x46   :  { %217 = vmatpush3.bf16.msra.mxu0 %v216_v25 }
  0x49   :  { %192 = vmatmul.mubr.f32.vlgmr.msra.gmra.mrb[0].mxu0 %v38_v26 }
 0x11c   :  { %v121_v27 = vpop.f32.mrb[0].mxu0 }
 0x11d   :  { %125 = vst [vmem:[#allocation7] sm:$0xff] %v121_v27  ;;  %v193_v28 = vpop.f32.mrb[1].mxu0 }
 0x11e   :  { %281 = shalt.err (!%p278_p6)
}
 0x11f   :  { %s282_s10 = scalar_lea.hbm %s366_s2, 128 }
 0x120   :  { %p283_p7 = scmp.ne.s32.totalorder %s366_s2, %s282_s10  ;;  %p286_p8 = scmp.lt.u32.totalorder %s282_s10, %s366_s2 }
 0x122   :  { %p288_p9 = pnand %p286_p8, %p283_p7 }
 0x124   :  { %291 = shalt.err (!%p288_p9)
}
 0x125   :  { %135 = dma.vmem_to_hbm [thread:$0]  %s133_s6, 128, %s366_s2, [#allocation4]  }
 0x126   :  { %296 = dma.done.wait [#allocation4], 128  }
 0x127   :  { %297 = vsyncadd [#allocation4], 4294967168 }
 0x128   :  { %139 = vsyncpa [#allocation3], 1 }
 0x129   :  { %140 = vsyncpa [#allocation6], 1 }
 0x12a   :  { %141 = vsyncpa [#allocation4], 1 }

</bundles_post_ra>
